<compile_context>
chip_gen: v7x
topology: tpu7x:2x2x1
jax: 0.10.0
libtpu: 0.0.40
codegen_flags: <defaults>
</compile_context>

<pallas_src>
import functools

import jax
import jax.numpy as jnp
from jax import lax
from jax.experimental import pallas as pl
from jax.experimental.pallas import tpu as pltpu

LANES = 128
MAX_BLOCK_ROWS = 8192   # 8192 * 128 * 4 B = 4 MiB per f32 input per buffer
CHUNK_ROWS = 512        # per-chunk intermediates: 512 * 128 * 4 B = 256 KiB each


def _cdiv(a, b):
    return -(-a // b)


def _round_up(x, m):
    return _cdiv(x, m) * m


def _chunk_loss_partial(pred_ref, target_ref, r0, nrows, *, alpha, gamma):
    """Focal loss for rows [r0, r0+nrows), folded to an (8, LANES) partial sum."""
    x = pred_ref[pl.ds(r0, nrows), :].astype(jnp.float32)
    t = target_ref[pl.ds(r0, nrows), :].astype(jnp.float32)
    pos = t > 0.5

    # p_t = sigmoid(z) with z = x for positives, -x for negatives.  The clip
    # keeps exp(-z) finite and nonzero; it is inert w.r.t. the reference
    # semantics because probs is clamped to [1e-4, 1] there anyway.
    z = jnp.clip(jnp.where(pos, x, -x), -20.0, 30.0)
    e = jnp.exp(-z)
    s = 1.0 + e                                   # = 1 / p_t
    # log(clamp(p_t, 1e-4, 1)) == -log(min(s, 1e4))
    log_p = -jnp.log(jnp.minimum(s, 1e4))
    # 1 - clamp(p_t, 1e-4, 1) == min(e / s, 1 - 1e-4)
    inv_s = pl.reciprocal(s, approx=True)         # cheap EUP vrcp ...
    inv_s = inv_s * (2.0 - s * inv_s)             # ... + two Newton steps (VPU)
    inv_s = inv_s * (2.0 - s * inv_s)             #     -> ~f32-exact 1/s
    q = jnp.minimum(e * inv_s, 1.0 - 1e-4)

    # focal = q ** gamma; integer gamma specializes to pure VPU multiplies.
    if float(gamma) == int(gamma) and 0 <= int(gamma) <= 8:
        g = int(gamma)
        if g == 0:
            focal = jnp.ones_like(q)
        else:
            focal = q
            for _ in range(g - 1):
                focal = focal * q
    else:
        focal = jnp.power(q, jnp.float32(gamma))  # non-integer gamma fallback

    alpha_t = jnp.where(pos, jnp.float32(alpha), jnp.float32(1.0 - alpha))
    loss = (-alpha_t) * focal * log_p

    # Sublane-aligned fold (nrows, 128) -> (8, 128): pure VPU adds.
    return loss.reshape(nrows // 8, 8, LANES).sum(axis=0)


def _bifocal_kernel(pred_ref, target_ref, out_ref, *, alpha, gamma,
                    block_rows, chunk_rows):
    num_full = block_rows // chunk_rows
    rem_rows = block_rows - num_full * chunk_rows     # multiple of 8

    part = functools.partial(_chunk_loss_partial, pred_ref, target_ref,
                             alpha=alpha, gamma=gamma)

    acc = jnp.zeros((8, LANES), jnp.float32)
    if num_full == 1:
        acc = acc + part(0, chunk_rows)
    else:
        def body(c, a):
            r0 = pl.multiple_of(c * chunk_rows, chunk_rows)
            return a + part(r0, chunk_rows)
        acc = lax.fori_loop(0, num_full, body, acc)
    if rem_rows:
        acc = acc + part(num_full * chunk_rows, rem_rows)

    out_ref[...] = acc.reshape(1, 8, LANES)


def bifocal_loss(pred, target, alpha=0.25, gamma=2, average=True):
    """JAX/Pallas equivalent of BiFocalLoss.forward. Returns a scalar."""
    pred_flat = jnp.reshape(pred, (-1,))
    target_flat = jnp.reshape(target, (-1,))
    n = pred_flat.shape[0]

    rows8 = _round_up(_cdiv(n, LANES), 8)

    # Grid sizing: cap blocks at MAX_BLOCK_ROWS; use >=2 grid steps whenever
    # there is enough work so v7x's second TensorCore is not left idle.
    grid_size = max(1, _cdiv(rows8, MAX_BLOCK_ROWS))
    if grid_size == 1 and rows8 > 8:
        grid_size = 2
    block_rows = _round_up(_cdiv(rows8, grid_size), 8)
    grid_size = _cdiv(rows8, block_rows)
    chunk_rows = min(CHUNK_ROWS, block_rows)

    total_rows = grid_size * block_rows
    total = total_rows * LANES

    pad = total - n
    if pad:
        # Sentinel pad: sigmoid(30) rounds to 1.0 in f32, so log_p == 0 exactly
        # and padded elements contribute exactly 0 -- no in-kernel mask needed.
        pred_flat = jnp.pad(pred_flat, (0, pad), constant_values=30.0)
        target_flat = jnp.pad(target_flat, (0, pad), constant_values=1.0)

    pred2d = pred_flat.reshape(total_rows, LANES)
    target2d = target_flat.reshape(total_rows, LANES)

    kernel = functools.partial(
        _bifocal_kernel, alpha=float(alpha), gamma=gamma,
        block_rows=block_rows, chunk_rows=chunk_rows)

    bytes_in = (pred2d.size * pred2d.dtype.itemsize
                + target2d.size * target2d.dtype.itemsize)
    cost = pl.CostEstimate(
        flops=16 * total,
        transcendentals=3 * total,                     # exp + log + rcp
        bytes_accessed=bytes_in + grid_size * 8 * LANES * 4)

    # Double-buffered inputs + headroom for the chunked intermediates; set
    # explicitly so big blocks also fit v5e's 16 MiB scoped-VMEM default while
    # staying under v7x's 64 MiB physical VMEM.
    in_buf_bytes = 2 * block_rows * LANES * (
        pred2d.dtype.itemsize + target2d.dtype.itemsize)
    vmem_limit = min(56 * 1024 * 1024, in_buf_bytes + 16 * 1024 * 1024)

    partials = pl.pallas_call(
        kernel,
        out_shape=jax.ShapeDtypeStruct((grid_size, 8, LANES), jnp.float32),
        grid_spec=pltpu.PrefetchScalarGridSpec(
            num_scalar_prefetch=0,
            grid=(grid_size,),
            in_specs=[
                # (v5e-only option if DMA gaps remain: pipeline_mode=pl.Buffered(3))
                pl.BlockSpec((block_rows, LANES), lambda i: (i, 0)),
                pl.BlockSpec((block_rows, LANES), lambda i: (i, 0)),
            ],
            out_specs=pl.BlockSpec((1, 8, LANES), lambda i: (i, 0, 0)),
        ),
        compiler_params=pltpu.CompilerParams(
            dimension_semantics=("parallel",),
            vmem_limit_bytes=vmem_limit),
        cost_estimate=cost,
    )(pred2d, target2d)

    total_loss = jnp.sum(partials)
    if average:
        return total_loss / jnp.float32(n)
    return total_loss


def _reference_bifocal(pred, target, alpha=0.25, gamma=2, average=True):
    """Pure-JAX reference mirroring the PyTorch code."""
    p = jax.nn.sigmoid(pred.reshape(-1).astype(jnp.float32))
    t = target.reshape(-1).astype(jnp.float32)
    probs = jnp.where(t > 0.5, p, 1.0 - p)
    probs = jnp.clip(probs, 1e-4, 1.0)
    alpha_t = jnp.where(t > 0.5, alpha, 1.0 - alpha)
    loss = -alpha_t * jnp.power(1.0 - probs, gamma) * jnp.log(probs)
    return jnp.mean(loss) if average else jnp.sum(loss)


if __name__ == "__main__":
    key = jax.random.PRNGKey(0)
    k1, k2, k3, k4, k5, k6 = jax.random.split(key, 6)

    # Shapes consistent with a dense binary prediction head: NCHW [2, 4, 16, 16]
    pred = jax.random.normal(k1, (2, 4, 16, 16), dtype=jnp.float32) * 2.0
    target = (jax.random.uniform(k2, (2, 4, 16, 16)) > 0.5).astype(jnp.float32)

    loss = bifocal_loss(pred, target, alpha=0.25, gamma=2, average=True)
    loss = jax.block_until_ready(loss)
    ref = _reference_bifocal(pred, target, alpha=0.25, gamma=2, average=True)
    assert jnp.allclose(loss, ref, rtol=1e-5, atol=1e-6), (loss, ref)

    # Non-lane-aligned size exercises the sentinel-padding path (sum mode).
    pred2 = jax.random.normal(k3, (3, 5, 7), dtype=jnp.float32)
    target2 = (jax.random.uniform(k4, (3, 5, 7)) > 0.5).astype(jnp.float32)
    loss2 = bifocal_loss(pred2, target2, alpha=0.25, gamma=2, average=False)
    loss2 = jax.block_until_ready(loss2)
    ref2 = _reference_bifocal(pred2, target2, alpha=0.25, gamma=2, average=False)
    assert jnp.allclose(loss2, ref2, rtol=1e-5, atol=1e-6), (loss2, ref2)

    # Larger (but still ~1 MB) input exercises the chunked fori_loop +
    # remainder-chunk path used for big blocks.
    pred3 = jax.random.normal(k5, (2, 4, 184, 184), dtype=jnp.float32) * 2.0
    target3 = (jax.random.uniform(k6, (2, 4, 184, 184)) > 0.5).astype(jnp.float32)
    loss3 = bifocal_loss(pred3, target3, alpha=0.25, gamma=2, average=True)
    loss3 = jax.block_until_ready(loss3)
    ref3 = _reference_bifocal(pred3, target3, alpha=0.25, gamma=2, average=True)
    assert jnp.allclose(loss3, ref3, rtol=3e-5, atol=1e-6), (loss3, ref3)

    print("KERNEL_OK")
</pallas_src>

<mosaic_0001>
module attributes {stable_mosaic.version = 11 : i64} {
  func.func @_bifocal_kernel(%arg0: i32, %arg1: memref<8x128xf32, #tpu.memory_space<vmem>>, %arg2: memref<8x128xf32, #tpu.memory_space<vmem>>, %arg3: memref<1x8x128xf32, #tpu.memory_space<vmem>>) attributes {dimension_semantics = [#tpu.dimension_semantics<parallel>], iteration_bounds = array<i64: 2>, scalar_prefetch = 0 : i64, scratch_operands = 0 : i64, tpu.core_type = #tpu.core_type<tc>, window_params = [{transform_indices = @transform_0, window_bounds = array<i64: 8, 128>}, {transform_indices = @transform_1, window_bounds = array<i64: 8, 128>}, {transform_indices = @transform_2, window_bounds = array<i64: 1, 8, 128>}]} {
    %cst = arith.constant 0.000000e+00 : f32
    %0 = vector.broadcast %cst : f32 to vector<8x128xf32>
    %c0 = arith.constant 0 : index
    %c0_0 = arith.constant 0 : index
    %1 = vector.load %arg1[%c0, %c0_0] : memref<8x128xf32, #tpu.memory_space<vmem>>, vector<8x128xf32>
    %c0_1 = arith.constant 0 : index
    %c0_2 = arith.constant 0 : index
    %2 = vector.load %arg2[%c0_1, %c0_2] : memref<8x128xf32, #tpu.memory_space<vmem>>, vector<8x128xf32>
    %cst_3 = arith.constant 5.000000e-01 : f32
    %3 = vector.broadcast %cst_3 : f32 to vector<8x128xf32>
    %4 = arith.cmpf ogt, %2, %3 : vector<8x128xf32>
    %cst_4 = arith.constant 0.000000e+00 : f32
    %5 = vector.broadcast %cst_4 : f32 to vector<8x128xf32>
    %6 = arith.subf %5, %1 : vector<8x128xf32>
    %7 = arith.select %4, %1, %6 : vector<8x128xi1>, vector<8x128xf32>
    %cst_5 = arith.constant -2.000000e+01 : f32
    %cst_6 = arith.constant 3.000000e+01 : f32
    %8 = vector.broadcast %cst_5 : f32 to vector<8x128xf32>
    %9 = arith.maximumf %8, %7 : vector<8x128xf32>
    %10 = vector.broadcast %cst_6 : f32 to vector<8x128xf32>
    %11 = arith.minimumf %10, %9 : vector<8x128xf32>
    %cst_7 = arith.constant 0.000000e+00 : f32
    %12 = vector.broadcast %cst_7 : f32 to vector<8x128xf32>
    %13 = arith.subf %12, %11 : vector<8x128xf32>
    %14 = math.exp %13 : vector<8x128xf32>
    %cst_8 = arith.constant 1.000000e+00 : f32
    %15 = vector.broadcast %cst_8 : f32 to vector<8x128xf32>
    %16 = arith.addf %15, %14 : vector<8x128xf32>
    %cst_9 = arith.constant 1.000000e+04 : f32
    %17 = vector.broadcast %cst_9 : f32 to vector<8x128xf32>
    %18 = arith.minimumf %16, %17 : vector<8x128xf32>
    %19 = math.log %18 : vector<8x128xf32>
    %cst_10 = arith.constant 0.000000e+00 : f32
    %20 = vector.broadcast %cst_10 : f32 to vector<8x128xf32>
    %21 = arith.subf %20, %19 : vector<8x128xf32>
    %22 = tpu.reciprocal %16 {approx = true} : vector<8x128xf32> -> vector<8x128xf32>
    %23 = arith.mulf %16, %22 : vector<8x128xf32>
    %cst_11 = arith.constant 2.000000e+00 : f32
    %24 = vector.broadcast %cst_11 : f32 to vector<8x128xf32>
    %25 = arith.subf %24, %23 : vector<8x128xf32>
    %26 = arith.mulf %22, %25 : vector<8x128xf32>
    %27 = arith.mulf %16, %26 : vector<8x128xf32>
    %cst_12 = arith.constant 2.000000e+00 : f32
    %28 = vector.broadcast %cst_12 : f32 to vector<8x128xf32>
    %29 = arith.subf %28, %27 : vector<8x128xf32>
    %30 = arith.mulf %26, %29 : vector<8x128xf32>
    %31 = arith.mulf %14, %30 : vector<8x128xf32>
    %cst_13 = arith.constant 0.999899983 : f32
    %32 = vector.broadcast %cst_13 : f32 to vector<8x128xf32>
    %33 = arith.minimumf %31, %32 : vector<8x128xf32>
    %34 = arith.mulf %33, %33 : vector<8x128xf32>
    %cst_14 = arith.constant 2.500000e-01 : f32
    %cst_15 = arith.constant 7.500000e-01 : f32
    %35 = vector.broadcast %cst_14 : f32 to vector<8x128xf32>
    %36 = vector.broadcast %cst_15 : f32 to vector<8x128xf32>
    %37 = arith.select %4, %35, %36 : vector<8x128xi1>, vector<8x128xf32>
    %cst_16 = arith.constant 0.000000e+00 : f32
    %38 = vector.broadcast %cst_16 : f32 to vector<8x128xf32>
    %39 = arith.subf %38, %37 : vector<8x128xf32>
    %40 = arith.mulf %39, %34 : vector<8x128xf32>
    %41 = arith.mulf %40, %21 : vector<8x128xf32>
    %42 = vector.shape_cast %41 : vector<8x128xf32> to vector<1x8x128xf32>
    %cst_17 = arith.constant dense<0.000000e+00> : vector<8x128xf32>
    %43 = vector.multi_reduction <add>, %42, %cst_17 [0] : vector<1x8x128xf32> to vector<8x128xf32>
    %44 = arith.addf %0, %43 : vector<8x128xf32>
    %45 = vector.shape_cast %44 : vector<8x128xf32> to vector<1x8x128xf32>
    %c0_18 = arith.constant 0 : index
    %c0_19 = arith.constant 0 : index
    %c0_20 = arith.constant 0 : index
    %46 = vector.load %arg3[%c0_18, %c0_19, %c0_20] : memref<1x8x128xf32, #tpu.memory_space<vmem>>, vector<1x8x128xf32>
    tpu.vector_store %arg3[%c0_18, %c0_19, %c0_20], %45 {strides = array<i32>} : memref<1x8x128xf32, #tpu.memory_space<vmem>>, vector<1x8x128xf32>,
    return
  }
  func.func @transform_0(%arg0: i32) -> (i32, i32) {
    %c0_i32 = arith.constant 0 : i32
    %c0_i32_0 = arith.constant 0 : i32
    return %arg0, %c0_i32 : i32, i32
  }
  func.func @transform_1(%arg0: i32) -> (i32, i32) {
    %c0_i32 = arith.constant 0 : i32
    %c0_i32_0 = arith.constant 0 : i32
    return %arg0, %c0_i32 : i32, i32
  }
  func.func @transform_2(%arg0: i32) -> (i32, i32, i32) {
    %c0_i32 = arith.constant 0 : i32
    %c0_i32_0 = arith.constant 0 : i32
    %c0_i32_1 = arith.constant 0 : i32
    return %arg0, %c0_i32, %c0_i32_0 : i32, i32, i32
  }
}

</mosaic_0001>

<bundles_post_ra>
// kernel: tpu_custom_call.1
= control target key start
LH: loop header
LB: loop body
LE: loop exit
PB: predicated region body
PF: predicated region fallthrough
CT: control target
= control target key end

     0   :  { %7 = vsyncpa [#allocation3], 0  ;;  %s775_s0 = inlined_call_operand.hbm [shape: f32[16,128], index: 0, kind: input, shape index: {}]   ;;  %s776_s1 = inlined_call_operand.hbm [shape: f32[16,128], index: 1, kind: input, shape index: {}]   ;;  %s777_s2 = inlined_call_operand.hbm [shape: f32[2,8,128], index: 2, kind: output, shape index: {}]  }
   0x1   :  { %9 = vsyncpa [#allocation3 + $0x1], 0 }
   0x2   :  { %10 = vsyncpa [#allocation6], 0 }
   0x3   :  { %12 = vsyncpa [#allocation6 + $0x1], 0 }
   0x4   :  { %13 = vsyncpa [#allocation4], 0 }
   0x5   :  { %15 = vsyncpa [#allocation4 + $0x1], 0  ;;  %s559_s9 = smov 0   ;;  %s561_s10 = smov 0  }
   0x6   :  { %s563_s11 = smov 0   ;;  %s565_s12 = smov 0  }
   0x7 LB: > { %s580_s13 = sadd.s32 4294967295, %s538_s12   ;;  %s335_s14 = sadd.s32 4294967294, %s538_s12   ;;  %s538_s12 = sphi %s565_s12, %s796_s12   ;;  %s534_s11 = sphi %s563_s11, %s795_s11   ;;  %s530_s10 = sphi %s561_s10, %s794_s10   ;;  %s526_s9 = sphi %s559_s9, %s793_s9  }
   0x8   : > { %s584_s15 = sadd.s32 1, %s538_s12   ;;  %s28_s16 = sadd.s32 1, %s534_s11 }
   0x9   : > { %s25_s17 = ssub.s32 %s538_s12, %s584_s15  ;;  %p35_p0 = scmp.ne.s32.totalorder %s534_s11, %s530_s10 }
   0xa   : > { %p26_p1 = scmp.eq.s32.totalorder %s25_s17, 0  ;;  %p36_p2 = scmp.eq.s32.totalorder %s538_s12, 0 }
   0xb   : > { %p41_p3 = scmp.ne.s32.totalorder %s530_s10, %s526_s9  ;;  %p42_p4 = scmp.eq.s32.totalorder %s580_s13, 0 }
   0xc   : > { %s596_s18 = scalar_select %p26_p1, %s534_s11, %s28_s16  }
   0xd   : > { %p598_p5 = por %p36_p2, %p35_p0  ;;  %p602_p6 = por %p42_p4, %p41_p3 }
   0xe   : > { %p91_p7 = scmp.eq.s32.totalorder %s580_s13, 1  ;;  %p97_p8 = scmp.eq.s32.totalorder %s335_s14, 1 }
   0xf   : > { %s781_s20 = scalar_select %p602_p6, 1, 0 }
  0x10   : > { %p367_p10 = scmp.lt.s32.totalorder %s538_s12, 2  ;;  %p609_p11 = por %p91_p7, %p35_p0 }
  0x11   : > { %p613_p12 = por %p97_p8, %p41_p3  ;;  %s618_s23 = sand.u32 1, %s534_s11  }
  0x12   : > { %s782_s21 = scalar_select %p609_p11, 1, 0 }
  0x13   : > { %s783_s22 = scalar_select %p613_p12, 1, 0 }
  0x14   : > { %s339_s24 = sshll.u32 %s538_s12, 7  ;;  %s338_s25 = sshll.u32 %s618_s23, 3 }
  0x15   : > { %s627_s28 = scalar_lea.hbm %s775_s0, %s339_s24  ;;  %s121_s29 = scalar_lea.vmem [#allocation2], %s338_s25 }
  0x16   : > { %s128_s30 = sshll.u32 %s121_s29, 4  ;;  %p633_p13 = pnand %p367_p10, %p598_p5  ;;  %s637_s30 = int_to_ptr.vmem [resolvable:$true] %s128_s30 }
  0x17   : > { %s118_s4 = scalar_lea.sflag [#allocation3], %s618_s23  ;;  %s408_s5 = scalar_lea.hbm %s627_s28, 128 }
  0x18   : > { %p409_p2 = scmp.ne.s32.totalorder %s627_s28, %s408_s5  ;;  %p410_p3 = pneg %p633_p13 }
  0x19   : > { %s413_s8 = scalar_lea.hbm %s775_s0, 256  ;;  %p414_p5 = scmp.lt.u32.totalorder %s627_s28, %s775_s0 }
  0x1a   : > { %p411_p4 = pnand %p410_p3, %p409_p2  ;;  %p415_p8 = scmp.lt.u32.totalorder %s413_s8, %s408_s5 }
  0x1b   : > { %p417_p9 = scmp.lt.u32.totalorder %s408_s5, %s627_s28 }
  0x1c   : > { %p412_p7 = pneg %p411_p4  ;;  %p416_p10 = por %p415_p8, %p414_p5 }
  0x1e   : > { %p418_p0 = por %p417_p9, %p416_p10 }
  0x20   : > { %p419_p1 = pnand %p418_p0, %p412_p7 }
  0x22   : > { %422 = shalt.err (!%p419_p1)
}
  0x23   : > { %s423_s17 = scalar_lea.vmem %s637_s30, 128  ;;  %s540_s19 = smov [#allocation2]  }
  0x24   : > { %p424_p2 = scmp.ne.s32.totalorder %s637_s30, %s423_s17  ;;  %s428_s26 = sshll.u32 %s540_s19, 4  ;;  %s429_s26 = int_to_ptr.vmem [resolvable:$false] %s428_s26 }
  0x25   : > { %s430_s27 = scalar_lea.vmem %s429_s26, 256  ;;  %p431_p11 = scmp.lt.s32.totalorder %s637_s30, %s429_s26 }
  0x26   : > { %p426_p4 = pnand %p424_p2, %p410_p3  ;;  %p432_p5 = scmp.lt.s32.totalorder %s430_s27, %s423_s17 }
  0x28   : > { %p427_p12 = pneg %p426_p4  ;;  %p433_p8 = por %p432_p5, %p431_p11 }
  0x2a   : > { %p434_p9 = pnand %p433_p8, %p427_p12 }
  0x2c   : > { %437 = shalt.err (!%p434_p9)
}
  0x2d   : > { %359 = dma.hbm_to_vmem [thread:$0]  (!%p633_p13), %s627_s28, 128, %s637_s30, %s118_s4  }
  0x2e   : > { %p785_p0 = scmp.lt.s32.totalorder %s538_s12, 3  ;;  %p786_p1 = scmp.ge.s32.totalorder %s538_s12, 1 }
  0x2f   : > { %s680_s7 = scalar_lea.hbm %s776_s1, %s339_s24  ;;  %s139_s8 = scalar_lea.vmem [#allocation5], %s338_s25 }
  0x30   : > { %p671_p7 = pnand %p786_p1, %p785_p0  ;;  %s146_s14 = sshll.u32 %s139_s8, 4  ;;  %s147_s14 = int_to_ptr.vmem [resolvable:$true] %s146_s14 }
  0x31   : > { %s136_s28 = scalar_lea.sflag [#allocation6], %s618_s23  ;;  %s438_s30 = scalar_lea.hbm %s680_s7, 128 }
  0x32   : > { %s787_s29 = scalar_select %p671_p7, 1, 0 }
  0x33   : > { %p439_p11 = scmp.ne.s32.totalorder %s680_s7, %s438_s30  ;;  %s443_s24 = scalar_lea.hbm %s776_s1, 256 }
  0x34   : > { %p444_p2 = scmp.lt.u32.totalorder %s680_s7, %s776_s1  ;;  %p445_p4 = scmp.lt.u32.totalorder %s443_s24, %s438_s30 }
  0x35   : > { %p441_p12 = pnand %p439_p11, %p410_p3  ;;  %p447_p8 = scmp.lt.u32.totalorder %s438_s30, %s680_s7 }
  0x36   : > { %p446_p5 = por %p445_p4, %p444_p2 }
  0x37   : > { %p442_p10 = pneg %p441_p12 }
  0x38   : > { %p448_p9 = por %p447_p8, %p446_p5 }
  0x3a   : > { %p449_p0 = pnand %p448_p9, %p442_p10 }
  0x3c   : > { %452 = shalt.err (!%p449_p0)
}
  0x3d   : > { %s453_s23 = scalar_lea.vmem %s147_s14, 128  ;;  %s541_s25 = smov [#allocation5]  }
  0x3e   : > { %p454_p1 = scmp.ne.s32.totalorder %s147_s14, %s453_s23  ;;  %s458_s26 = sshll.u32 %s541_s25, 4  ;;  %s459_s26 = int_to_ptr.vmem [resolvable:$false] %s458_s26 }
  0x3f   : > { %s460_s27 = scalar_lea.vmem %s459_s26, 256  ;;  %p461_p6 = scmp.lt.s32.totalorder %s147_s14, %s459_s26 }
  0x40   : > { %p456_p11 = pnand %p454_p1, %p410_p3  ;;  %p462_p7 = scmp.lt.s32.totalorder %s460_s27, %s453_s23 }
  0x42   : > { %p457_p12 = pneg %p456_p11  ;;  %p463_p2 = por %p462_p7, %p461_p6 }
  0x44   : > { %p464_p4 = pnand %p463_p2, %p457_p12 }
  0x46   : > { %467 = shalt.err (!%p464_p4)
}
  0x47   : > { %362 = dma.hbm_to_vmem [thread:$0]  (!%p633_p13), %s680_s7, 128, %s147_s14, %s136_s28  }
  0x48   : > { %p788_p10 = scmp.ne.s32.totalorder %s787_s29, 0 }
  0x49   : > { %s707_s5 = sand.u32 (!%p788_p10), 1, %s530_s10   ;;  %p789_p6 = scmp.ne.s32.totalorder (!%p788_p10), %s781_s20, 0 }
  0x4a   : > { %155 = sbr.rel (%p788_p10) target bundleno = 156 (0x9c), region = 28  ;;  %s710_s6 = sshll.u32 (!%p788_p10), %s707_s5, 3 }
  0x4b   : > { %s158_s8 = scalar_lea.sflag (!%p788_p10), [#allocation3], %s707_s5  ;;  %s161_s30 = scalar_lea.vmem (!%p788_p10), [#allocation2], %s710_s6 }
  0x51   : > { %513 = dma.done.wait (%p789_p6), %s158_s8, 128  }
  0x52   : > { %515 = vsyncadd (%p789_p6), %s158_s8, 4294967168  ;;  %s167_s3 = scalar_lea.sflag [#allocation6], %s707_s5  ;;  %s170_s29 = scalar_lea.vmem [#allocation5], %s710_s6 }
  0x53   : > { %517 = dma.done.wait (%p789_p6), %s167_s3, 128  }
  0x54   : > { %519 = vsyncadd (%p789_p6), %s167_s3, 4294967168  ;;  %v196_v0 = vld [vmem:[%s161_s30] sm:$0xff]  ;;  %v197_v1 = vld [vmem:[%s170_s29] sm:$0xff]  ;;  %v542_v19 = vmov 0.75   ;;  %s195_s20 = scalar_lea.vmem [#allocation7], %s710_s6  ;;  %s347_s14 = sshll.u32 %s580_s13, 7 }
  0x55   : > { %vm198_vm0 = vcmp.gt.f32.partialorder %v197_v1, 0.5  ;;  %v199_v2 = vsub.f32 0.0, %v196_v0  ;;  %s242_s7 = sshll.u32 %s195_s20, 4  ;;  %s733_s16 = scalar_lea.hbm %s777_s2, %s347_s14  ;;  %s728_s7 = int_to_ptr.vmem [resolvable:$true] %s242_s7 }
  0x56   : > { %v221_v20 = vsel %vm198_vm0, 0.25, %v542_v19  ;;  %s229_s24 = scalar_lea.sflag [#allocation4], %s707_s5  ;;  %s468_s17 = scalar_lea.vmem %s728_s7, 128 }
  0x57   : > { %v200_v3 = vsel %vm198_vm0, %v196_v0, %v199_v2  ;;  %v222_v24 = vsub.f32 0.0, %v221_v20  ;;  %p469_p13 = scmp.ne.s32.totalorder %s728_s7, %s468_s17  ;;  %p790_p3 = scmp.ne.s32.totalorder %s782_s21, 0 }
  0x58   : > { %v201_v4 = vmax.f32 %v200_v3, -20.0  ;;  %s543_s13 = smov [#allocation7]  }
  0x59   : > { %p470_p7 = pnand %p469_p13, %p790_p3  ;;  %s472_s19 = sshll.u32 %s543_s13, 4  ;;  %s473_s19 = int_to_ptr.vmem [resolvable:$false] %s472_s19 }
  0x5a   : > { %v202_v5 = vmin.f32 %v201_v4, 30.0  ;;  %s474_s23 = scalar_lea.vmem %s473_s19, 256  ;;  %p475_p8 = scmp.lt.s32.totalorder %s728_s7, %s473_s19 }
  0x5b   : > { %p471_p5 = pneg %p470_p7  ;;  %p476_p9 = scmp.lt.s32.totalorder %s474_s23, %s468_s17 }
  0x5c   : > { %v203_v6 = vsub.f32 0.0, %v202_v5 }
  0x5d   : > { %p477_p0 = por %p476_p9, %p475_p8 }
  0x5e   : > { %v204_v7 = vmul.f32 1.442695, %v203_v6 }
  0x5f   : > { %p478_p1 = pnand %p477_p0, %p471_p5 }
  0x60   : > { %402 = vpow2.f32 %v204_v7 }
  0x6a   : > { %v403_v8 = vpop.eup %402 }
  0x6b   : > { %v206_v9 = vadd.f32 1.0, %v403_v8 }
  0x6d   : > { %404 = vrcp.f32 %v206_v9  ;;  %v207_v10 = vmin.f32 %v206_v9, 10000.0 }
  0x6f   : > { %406 = vlog2.f32 %v207_v10 }
  0x77   : > { %v405_v11 = vpop.eup %404 }
  0x78   : > { %v212_v12 = vmul.f32 %v405_v11, %v206_v9 }
  0x79   : > { %v407_v17 = vpop.eup %406 }
  0x7a   : > { %v213_v13 = vsub.f32 2.0, %v212_v12  ;;  %v209_v21 = vmul.f32 0.6931472, %v407_v17 }
  0x7c   : > { %v214_v14 = vmul.f32 %v405_v11, %v213_v13  ;;  %v210_v25 = vsub.f32 0.0, %v209_v21 }
  0x7e   : > { %v215_v15 = vmul.f32 %v214_v14, %v206_v9 }
  0x80   : > { %v216_v16 = vsub.f32 2.0, %v215_v15 }
  0x82   : > { %v217_v18 = vmul.f32 %v216_v16, %v214_v14 }
  0x84   : > { %v218_v22 = vmul.f32 %v403_v8, %v217_v18 }
  0x86   : > { %v219_v23 = vmin.f32 %v218_v22, 0.9999 }
  0x88   : > { %v220_v26 = vmul.f32 %v219_v23, %v219_v23 }
  0x8a   : > { %v223_v27 = vmul.f32 %v222_v24, %v220_v26 }
  0x8c   : > { %v224_v28 = vmul.f32 %v223_v27, %v210_v25 }
  0x8e   : > { %227 = vst [vmem:[%s195_s20] sm:$0xff] %v224_v28 }
  0x8f   : > { %481 = shalt.err (!%p478_p1)
}
  0x90   : > { %s482_s25 = scalar_lea.hbm %s733_s16, 128  ;;  %s486_s5 = scalar_lea.hbm %s777_s2, 256 }
  0x91   : > { %p483_p11 = scmp.ne.s32.totalorder %s733_s16, %s482_s25  ;;  %p487_p4 = scmp.lt.u32.totalorder %s733_s16, %s777_s2 }
  0x92   : > { %p488_p10 = scmp.lt.u32.totalorder %s486_s5, %s482_s25  ;;  %p490_p13 = scmp.lt.u32.totalorder %s482_s25, %s733_s16 }
  0x93   : > { %p484_p12 = pnand %p483_p11, %p790_p3 }
  0x94   : > { %p489_p6 = por %p488_p10, %p487_p4 }
  0x95   : > { %p485_p2 = pneg %p484_p12 }
  0x96   : > { %p491_p7 = por %p490_p13, %p489_p6 }
  0x98   : > { %p492_p5 = pnand %p491_p7, %p485_p2 }
  0x9a   : > { %495 = shalt.err (!%p492_p5)
}
  0x9b   : > { %354 = dma.vmem_to_hbm [thread:$0]  (%p790_p3), %s728_s7, 128, %s733_s16, %s229_s24  }
  0x9c PF: > { %s254_s30 = sand.u32 1, %s526_s9   ;;  %p791_p8 = scmp.ne.s32.totalorder %s783_s22, 0 }
  0x9d   : > { %p792_p9 = scmp.ge.s32.totalorder %s538_s12, 2  ;;  %s255_s3 = scalar_lea.sflag [#allocation4], %s254_s30 }
  0x9f   : > { %p364_p0 = pnand %p792_p9, %p791_p8 }
  0xa1   : > { %521 = dma.done.wait (!%p364_p0), %s255_s3, 128  }
  0xa2   : > { %523 = vsyncadd (!%p364_p0), %s255_s3, 4294967168  ;;  %p18_p1 = scmp.ge.s32.totalorder %s584_s15, 4   ;;  %s793_s9 = smov %s530_s10 }
  0xa3   : > { %s794_s10 = smov %s534_s11  ;;  %s795_s11 = smov %s596_s18 }
  0xa4   : > { %s796_s12 = smov %s584_s15  ;;  %20 = sbr.rel (!%p18_p1) target bundleno = 7 (0x7), region = 86 }
  0xab   :  { %260 = vsyncpa [#allocation3], 1 }
  0xac   :  { %262 = vsyncpa [#allocation3 + $0x1], 1 }
  0xad   :  { %263 = vsyncpa [#allocation6], 1 }
  0xae   :  { %265 = vsyncpa [#allocation6 + $0x1], 1 }
  0xaf   :  { %266 = vsyncpa [#allocation4], 1 }
  0xb0   :  { %268 = vsyncpa [#allocation4 + $0x1], 1 }

</bundles_post_ra>
